<compile_context>
chip_gen: v7x
topology: tpu7x:2x2x1
jax: 0.10.0
libtpu: 0.0.40
codegen_flags: <defaults>
</compile_context>

<pallas_src>
import functools

import jax
import jax.numpy as jnp
import numpy as np
from jax import lax
from jax.experimental import pallas as pl
from jax.experimental.pallas import tpu as pltpu


# --------------------------------------------------------------------------
# Tile selection
# --------------------------------------------------------------------------

# Budget for the double-buffered input tiles + scratch: fits v5e's ~16 MiB
# scoped-VMEM default; v6e/v7x have 32 MiB scoped (v7x: 64 MiB physical/TC).
_VMEM_TILE_BUDGET = 12 * 1024 * 1024
_VMEM_LIMIT_BYTES = 32 * 1024 * 1024


def _pick_tile_d(d):
    """Split D into lane-aligned (multiple-of-128) chunks that exactly divide D
    so the leading 'parallel' grid axis gives both v7x TensorCores work."""
    if d % 256 == 0:
        half = d // 2
        for cand in (512, 384, 256, 128):
            if cand <= half and d % cand == 0:
                return cand
    return d


def _pick_tile_n(n, b, tile_d, seq_itemsize, msk_itemsize):
    """Largest reduction tile whose pipeline buffers fit the VMEM budget.
    Big tiles amortise the ~0.35us per-grid-step overhead (mem-bound kernels
    go from ~30% to ~85% of HBM roofline between tile 128 and 512-1024)."""
    per_row = 2 * b * tile_d * seq_itemsize            # double-buffered seq
    if msk_itemsize is not None:
        bp = max(8, b)                                  # sublane padding
        per_row += 2 * bp * msk_itemsize + bp * 4       # msk bufs + f32 msk acc
    tile_n = _VMEM_TILE_BUDGET // per_row
    if tile_n >= n:
        return n
    # Partial axis: msk's block puts tile_n on lanes -> must be a multiple of
    # 128 (also satisfies f32/bf16/int8 sublane packing for the seq block).
    return max(128, (tile_n // 128) * 128)


# --------------------------------------------------------------------------
# Kernels
# --------------------------------------------------------------------------

def _masked_readout_kernel(n, tile_n, ragged,
                           seq_ref, msk_ref, out_ref, acc_ref, msk_acc_ref):
    """acc[b,d] += sum_n seq[b,n,d]*msk[b,n];  out = acc / sum_{b,n} msk."""
    j = pl.program_id(1)                      # reduction (node) axis, innermost

    @pl.when(j == 0)
    def _init():
        acc_ref[...] = jnp.zeros_like(acc_ref)
        msk_acc_ref[...] = jnp.zeros_like(msk_acc_ref)

    seq = seq_ref[...].astype(jnp.float32)    # (B, TILE_N, TILE_D) f32 accum
    msk = msk_ref[...].astype(jnp.float32)    # (B, TILE_N)

    if ragged:  # compiled only when N % TILE_N != 0; no wrapper-side pad
        base = j * tile_n
        valid2 = (base + lax.broadcasted_iota(jnp.int32, msk.shape, 1)) < n
        valid3 = (base + lax.broadcasted_iota(jnp.int32, seq.shape, 1)) < n
        msk = jnp.where(valid2, msk, 0.0)
        seq = jnp.where(valid3, seq, 0.0)     # OOB rows may hold garbage/NaN

    # VPU multiply + sublane reduce; msk kept compact (B, TILE_N).
    acc_ref[...] += jnp.sum(seq * msk[:, :, None], axis=1)     # (B, TILE_D)
    # Global normaliser: plain VPU add per tile; scalar reduce only at the end.
    msk_acc_ref[...] += msk

    @pl.when(j == pl.num_programs(1) - 1)
    def _finalize():
        total = jnp.sum(msk_acc_ref[...])     # one exact divide per kernel
        out_ref[...] = (acc_ref[...] / total).astype(out_ref.dtype)


def _mean_readout_kernel(n, tile_n, ragged, inv_n,
                         seq_ref, out_ref, acc_ref):
    """out[b,:] = mean_n seq[b,n,:]  (msk is None path)."""
    j = pl.program_id(1)

    @pl.when(j == 0)
    def _init():
        acc_ref[...] = jnp.zeros_like(acc_ref)

    seq = seq_ref[...].astype(jnp.float32)
    if ragged:
        base = j * tile_n
        valid3 = (base + lax.broadcasted_iota(jnp.int32, seq.shape, 1)) < n
        seq = jnp.where(valid3, seq, 0.0)
    acc_ref[...] += jnp.sum(seq, axis=1)                        # (B, TILE_D)

    @pl.when(j == pl.num_programs(1) - 1)
    def _finalize():
        out_ref[...] = (acc_ref[...] * inv_n).astype(out_ref.dtype)


# --------------------------------------------------------------------------
# Wrapper
# --------------------------------------------------------------------------

def avg_readout(seq, msk=None, *, tile_n=None):
    """Pallas TPU implementation of AvgReadout.forward(seq, msk).

    seq: (B, N, D) array (any float dtype, streamed natively).
    msk: None or (B, N) array.
    Returns (B, D) in seq.dtype (accumulation is f32 in-kernel).
    """
    seq = jnp.asarray(seq)                    # native dtype; no upcast, no pad
    b, n, d = seq.shape
    if msk is not None:
        msk = jnp.asarray(msk)

    tile_d = _pick_tile_d(d)
    n_d_tiles = d // tile_d

    if tile_n is None:
        tile_n = _pick_tile_n(n, b, tile_d, seq.dtype.itemsize,
                              None if msk is None else msk.dtype.itemsize)
    if tile_n >= n or n <= 128:
        tile_n = n
    else:
        tile_n = max(128, (tile_n // 128) * 128)
    n_tiles = pl.cdiv(n, tile_n)
    ragged = (n % tile_n) != 0

    grid = (n_d_tiles, n_tiles)               # reduction axis last / innermost
    seq_spec = pl.BlockSpec((b, tile_n, tile_d), lambda i, j: (0, j, i))
    out_spec = pl.BlockSpec((b, tile_d), lambda i, j: (0, i))  # resident acc
    out_shape = jax.ShapeDtypeStruct((b, d), seq.dtype)
    cparams = pltpu.CompilerParams(
        dimension_semantics=("parallel", "arbitrary"),
        vmem_limit_bytes=_VMEM_LIMIT_BYTES)

    out_bytes = b * d * seq.dtype.itemsize
    seq_bytes = b * n * d * seq.dtype.itemsize

    if msk is None:
        kernel = functools.partial(_mean_readout_kernel, n, tile_n, ragged,
                                   1.0 / float(n))
        grid_spec = pltpu.PrefetchScalarGridSpec(
            num_scalar_prefetch=0, grid=grid,
            in_specs=[seq_spec], out_specs=out_spec,
            scratch_shapes=[pltpu.VMEM((b, tile_d), jnp.float32)])
        cost = pl.CostEstimate(flops=b * n * d, transcendentals=0,
                               bytes_accessed=seq_bytes + out_bytes)
        return pl.pallas_call(kernel, out_shape=out_shape, grid_spec=grid_spec,
                              compiler_params=cparams,
                              cost_estimate=cost)(seq)

    msk_spec = pl.BlockSpec((b, tile_n), lambda i, j: (0, j))
    kernel = functools.partial(_masked_readout_kernel, n, tile_n, ragged)
    grid_spec = pltpu.PrefetchScalarGridSpec(
        num_scalar_prefetch=0, grid=grid,
        in_specs=[seq_spec, msk_spec], out_specs=out_spec,
        scratch_shapes=[pltpu.VMEM((b, tile_d), jnp.float32),   # weighted sum
                        pltpu.VMEM((b, tile_n), jnp.float32)])  # mask sum
    msk_bytes = b * n * msk.dtype.itemsize
    cost = pl.CostEstimate(flops=2 * b * n * d, transcendentals=0,
                           bytes_accessed=seq_bytes + msk_bytes + out_bytes)
    return pl.pallas_call(kernel, out_shape=out_shape, grid_spec=grid_spec,
                          compiler_params=cparams,
                          cost_estimate=cost)(seq, msk)


def _reference(seq, msk=None):
    # Pure-JAX mirror of the PyTorch forward (computed in f32).
    seq = jnp.asarray(seq, jnp.float32)
    if msk is None:
        return jnp.mean(seq, axis=1)
    m = jnp.asarray(msk, jnp.float32)[..., None]
    return jnp.sum(seq * m, axis=1) / jnp.sum(m)


if __name__ == "__main__":
    B, N, D = 2, 200, 256          # batch, nodes (ragged vs 128), hidden
    key = jax.random.PRNGKey(0)
    k1, k2 = jax.random.split(key)

    seq = jax.random.normal(k1, (B, N, D), jnp.float32)
    msk = (jax.random.uniform(k2, (B, N)) > 0.3).astype(jnp.float32)

    # Auto-tiled path (single N tile at this size).
    out_masked = jax.block_until_ready(avg_readout(seq, msk))
    out_mean = jax.block_until_ready(avg_readout(seq, None))
    # Force the multi-tile + ragged-tail in-kernel masking path.
    out_masked_t = jax.block_until_ready(avg_readout(seq, msk, tile_n=128))
    out_mean_t = jax.block_until_ready(avg_readout(seq, None, tile_n=128))
    # Native bf16 streaming (cast + accumulation stay f32 in-kernel).
    seq_bf16 = seq.astype(jnp.bfloat16)
    out_bf16 = jax.block_until_ready(avg_readout(seq_bf16, msk))

    ref_masked = _reference(seq, msk)
    ref_mean = _reference(seq, None)
    ref_bf16 = _reference(seq_bf16, msk)

    np.testing.assert_allclose(np.asarray(out_masked), np.asarray(ref_masked),
                               rtol=1e-4, atol=1e-5)
    np.testing.assert_allclose(np.asarray(out_mean), np.asarray(ref_mean),
                               rtol=1e-4, atol=1e-5)
    np.testing.assert_allclose(np.asarray(out_masked_t), np.asarray(ref_masked),
                               rtol=1e-4, atol=1e-5)
    np.testing.assert_allclose(np.asarray(out_mean_t), np.asarray(ref_mean),
                               rtol=1e-4, atol=1e-5)
    np.testing.assert_allclose(np.asarray(out_bf16.astype(jnp.float32)),
                               np.asarray(ref_bf16), rtol=1e-2, atol=1e-3)
    print("KERNEL_OK")
</pallas_src>

<mosaic_0001>
module attributes {stable_mosaic.version = 11 : i64} {
  func.func @_masked_readout_kernel(%arg0: i32, %arg1: i32, %arg2: memref<2x200x128xf32, #tpu.memory_space<vmem>>, %arg3: memref<2x200xf32, #tpu.memory_space<vmem>>, %arg4: memref<2x128xf32, #tpu.memory_space<vmem>>, %arg5: memref<2x128xf32, #tpu.memory_space<vmem>>, %arg6: memref<2x200xf32, #tpu.memory_space<vmem>>) attributes {dimension_semantics = [#tpu.dimension_semantics<parallel>, #tpu.dimension_semantics<arbitrary>], iteration_bounds = array<i64: 2, 1>, scalar_prefetch = 0 : i64, scratch_operands = 2 : i64, tpu.core_type = #tpu.core_type<tc>, window_params = [{transform_indices = @transform_0, window_bounds = array<i64: 2, 200, 128>}, {transform_indices = @transform_1, window_bounds = array<i64: 2, 200>}, {transform_indices = @transform_2, window_bounds = array<i64: 2, 128>}]} {
    %c0_i32 = arith.constant 0 : i32
    %0 = arith.cmpi eq, %arg1, %c0_i32 : i32
    %1 = arith.extui %0 : i1 to i32
    %c0_i32_0 = arith.constant 0 : i32
    %2 = arith.cmpi ne, %1, %c0_i32_0 : i32
    scf.if %2 {
      %cst_15 = arith.constant 0.000000e+00 : f32
      %18 = vector.broadcast %cst_15 : f32 to vector<2x128xf32>
      %c0_16 = arith.constant 0 : index
      %c0_17 = arith.constant 0 : index
      %19 = vector.load %arg5[%c0_16, %c0_17] : memref<2x128xf32, #tpu.memory_space<vmem>>, vector<2x128xf32>
      tpu.vector_store %arg5[%c0_16, %c0_17], %18 {strides = array<i32>} : memref<2x128xf32, #tpu.memory_space<vmem>>, vector<2x128xf32>,
      %cst_18 = arith.constant 0.000000e+00 : f32
      %20 = vector.broadcast %cst_18 : f32 to vector<2x200xf32>
      %c0_19 = arith.constant 0 : index
      %c0_20 = arith.constant 0 : index
      %21 = vector.load %arg6[%c0_19, %c0_20] : memref<2x200xf32, #tpu.memory_space<vmem>>, vector<2x200xf32>
      tpu.vector_store %arg6[%c0_19, %c0_20], %20 {strides = array<i32>} : memref<2x200xf32, #tpu.memory_space<vmem>>, vector<2x200xf32>,
    } else {
    }
    %c0 = arith.constant 0 : index
    %c0_1 = arith.constant 0 : index
    %c0_2 = arith.constant 0 : index
    %3 = vector.load %arg2[%c0, %c0_1, %c0_2] : memref<2x200x128xf32, #tpu.memory_space<vmem>>, vector<2x200x128xf32>
    %c0_3 = arith.constant 0 : index
    %c0_4 = arith.constant 0 : index
    %4 = vector.load %arg3[%c0_3, %c0_4] : memref<2x200xf32, #tpu.memory_space<vmem>>, vector<2x200xf32>
    %c0_5 = arith.constant 0 : index
    %c0_6 = arith.constant 0 : index
    %5 = vector.load %arg5[%c0_5, %c0_6] : memref<2x128xf32, #tpu.memory_space<vmem>>, vector<2x128xf32>
    %6 = vector.shape_cast %4 : vector<2x200xf32> to vector<2x200x1xf32>
    %7 = vector.broadcast %6 : vector<2x200x1xf32> to vector<2x200x128xf32>
    %8 = arith.mulf %3, %7 : vector<2x200x128xf32>
    %cst = arith.constant dense<0.000000e+00> : vector<2x128xf32>
    %9 = vector.multi_reduction <add>, %8, %cst [1] : vector<2x200x128xf32> to vector<2x128xf32>
    %10 = arith.addf %5, %9 : vector<2x128xf32>
    %c0_7 = arith.constant 0 : index
    %c0_8 = arith.constant 0 : index
    %11 = vector.load %arg5[%c0_7, %c0_8] : memref<2x128xf32, #tpu.memory_space<vmem>>, vector<2x128xf32>
    tpu.vector_store %arg5[%c0_7, %c0_8], %10 {strides = array<i32>} : memref<2x128xf32, #tpu.memory_space<vmem>>, vector<2x128xf32>,
    %c0_9 = arith.constant 0 : index
    %c0_10 = arith.constant 0 : index
    %12 = vector.load %arg6[%c0_9, %c0_10] : memref<2x200xf32, #tpu.memory_space<vmem>>, vector<2x200xf32>
    %13 = arith.addf %12, %4 : vector<2x200xf32>
    %c0_11 = arith.constant 0 : index
    %c0_12 = arith.constant 0 : index
    %14 = vector.load %arg6[%c0_11, %c0_12] : memref<2x200xf32, #tpu.memory_space<vmem>>, vector<2x200xf32>
    tpu.vector_store %arg6[%c0_11, %c0_12], %13 {strides = array<i32>} : memref<2x200xf32, #tpu.memory_space<vmem>>, vector<2x200xf32>,
    %c0_i32_13 = arith.constant 0 : i32
    %15 = arith.cmpi eq, %arg1, %c0_i32_13 : i32
    %16 = arith.extui %15 : i1 to i32
    %c0_i32_14 = arith.constant 0 : i32
    %17 = arith.cmpi ne, %16, %c0_i32_14 : i32
    scf.if %17 {
      %c0_15 = arith.constant 0 : index
      %c0_16 = arith.constant 0 : index
      %18 = vector.load %arg6[%c0_15, %c0_16] : memref<2x200xf32, #tpu.memory_space<vmem>>, vector<2x200xf32>
      %19 = vector.shape_cast %18 : vector<2x200xf32> to vector<1x2x200xf32>
      %cst_17 = arith.constant dense<0.000000e+00> : vector<1xf32>
      %20 = vector.multi_reduction <add>, %19, %cst_17 [1, 2] : vector<1x2x200xf32> to vector<1xf32>
      %21 = vector.shape_cast %20 : vector<1xf32> to vector<1x1x1xf32>
      %22 = vector.extract %21[0, 0, 0] : f32 from vector<1x1x1xf32>
      %c0_18 = arith.constant 0 : index
      %c0_19 = arith.constant 0 : index
      %23 = vector.load %arg5[%c0_18, %c0_19] : memref<2x128xf32, #tpu.memory_space<vmem>>, vector<2x128xf32>
      %24 = vector.broadcast %22 : f32 to vector<2x128xf32>
      %25 = arith.divf %23, %24 : vector<2x128xf32>
      %c0_20 = arith.constant 0 : index
      %c0_21 = arith.constant 0 : index
      %26 = vector.load %arg4[%c0_20, %c0_21] : memref<2x128xf32, #tpu.memory_space<vmem>>, vector<2x128xf32>
      tpu.vector_store %arg4[%c0_20, %c0_21], %25 {strides = array<i32>} : memref<2x128xf32, #tpu.memory_space<vmem>>, vector<2x128xf32>,
    } else {
    }
    return
  }
  func.func @transform_0(%arg0: i32, %arg1: i32) -> (i32, i32, i32) {
    %c0_i32 = arith.constant 0 : i32
    %c0_i32_0 = arith.constant 0 : i32
    return %c0_i32, %arg1, %arg0 : i32, i32, i32
  }
  func.func @transform_1(%arg0: i32, %arg1: i32) -> (i32, i32) {
    %c0_i32 = arith.constant 0 : i32
    %c0_i32_0 = arith.constant 0 : i32
    return %c0_i32, %arg1 : i32, i32
  }
  func.func @transform_2(%arg0: i32, %arg1: i32) -> (i32, i32) {
    %c0_i32 = arith.constant 0 : i32
    %c0_i32_0 = arith.constant 0 : i32
    return %c0_i32, %arg0 : i32, i32
  }
}

</mosaic_0001>

<bundles_post_ra>
// kernel: tpu_custom_call.1
= control target key start
LH: loop header
LB: loop body
LE: loop exit
PB: predicated region body
PF: predicated region fallthrough
CT: control target
= control target key end

     0   :  { %7 = vsyncpa [#allocation5], 0  ;;  %s1356_s0 = inlined_call_operand.hbm [shape: f32[2,200,256], index: 0, kind: input, shape index: {}]   ;;  %s1357_s1 = inlined_call_operand.hbm [shape: f32[2,200], index: 1, kind: input, shape index: {}]   ;;  %s1358_s2 = inlined_call_operand.hbm [shape: f32[2,256], index: 2, kind: output, shape index: {}]  }
   0x1   :  { %9 = vsyncpa [#allocation5 + $0x1], 0 }
   0x2   :  { %10 = vsyncpa [#allocation8], 0 }
   0x3   :  { %11 = vsyncpa [#allocation6], 0 }
   0x4   :  { %13 = vsyncpa [#allocation6 + $0x1], 0  ;;  %s1014_s9 = smov 0   ;;  %s1016_s10 = smov 0  }
   0x5   :  { %s1018_s11 = smov 0   ;;  %s1020_s12 = smov 0  }
   0x6   :  { %s1022_s13 = smov 0   ;;  %s1024_s14 = smov 0  }
   0x7 LB: > { %s747_s15 = sadd.s32 4294967295, %s989_s14   ;;  %s748_s16 = sadd.s32 4294967294, %s989_s14   ;;  %s989_s14 = sphi %s1024_s14, %s19_s14   ;;  %s985_s13 = sphi %s1022_s13, %s1388_s13   ;;  %s981_s12 = sphi %s1020_s12, %s1387_s12   ;;  %s977_s11 = sphi %s1018_s11, %s1386_s11   ;;  %s973_s10 = sphi %s1016_s10, %s1385_s10   ;;  %s969_s9 = sphi %s1014_s9, %s1384_s9  }
   0x8   : > { %s40_s17 = sadd.s32 1, %s977_s11  ;;  %p47_p0 = scmp.ne.s32.totalorder %s977_s11, %s973_s10 }
   0x9   : > { %p48_p1 = scmp.eq.s32.totalorder %s989_s14, 0  ;;  %p53_p2 = scmp.ne.s32.totalorder %s973_s10, %s969_s9 }
   0xa   : > { %p1052_p3 = scmp.eq.s32.totalorder %s747_s15, 0  ;;  %p103_p4 = scmp.eq.s32.totalorder %s747_s15, 1 }
   0xb   : > { %p1056_p5 = por %p48_p1, %p47_p0  ;;  %p109_p6 = scmp.eq.s32.totalorder %s748_s16, 1 }
   0xc   : > { %s1365_s18 = scalar_select %p1052_p3, 1, 0 }
   0xd   : > { %p1062_p7 = por %p1052_p3, %p53_p2  ;;  %p1066_p8 = por %p103_p4, %p47_p0 }
   0xe   : > { %p1070_p9 = por %p109_p6, %p53_p2  ;;  %p749_p10 = scmp.ge.s32.totalorder %s989_s14, 1 }
   0xf   : > { %s1367_s20 = scalar_select %p1062_p7, 1, 0 }
  0x10   : > { %s1368_s21 = scalar_select %p1066_p8, 1, 0 }
  0x11   : > { %s1369_s22 = scalar_select %p1070_p9, 1, 0 }
  0x12   : > { %p116_p11 = scmp.lt.s32.totalorder %s989_s14, 3  ;;  %s991_s24 = smov [#allocation7]  }
  0x13   : > { %s132_s25 = sshll.u32 %s991_s24, 4  ;;  %p786_p1 = scmp.lt.s32.totalorder %s989_s14, 2  ;;  %s133_s25 = int_to_ptr.vmem [resolvable:$true] %s132_s25 }
  0x14   : > { %p1077_p13 = pnand %p749_p10, %p116_p11  ;;  %s31_s28 = sadd.s32 1, %s985_s13 }
  0x15   : > { %p1086_p4 = pnand %p786_p1, %p1056_p5  ;;  %p1097_p6 = scmp.ge.s32.totalorder %s31_s28, 2 }
  0x16   : > { %s1370_s23 = scalar_select %p1077_p13, 1, 0 }
  0x17   : > { %p773_p0 = pneg %p1077_p13  ;;  %s143_s30 = sand.u32 1, %s977_s11  }
  0x18   : > { %s1371_s26 = scalar_select %p1086_p4, 1, 0 }
  0x19   : > { %p1092_p2 = pnand %p773_p0, %p1052_p3  ;;  %s845_s5 = scalar_lea.hbm %s1357_s1, 64 }
  0x1a   : > { %s1373_s29 = scalar_select %p1097_p6, 1, 0 }
  0x1b   : > { %p846_p5 = scmp.ne.s32.totalorder %s1357_s1, %s845_s5  ;;  %p847_p10 = pneg %p1092_p2 }
  0x1c   : > { %p852_p0 = scmp.lt.u32.totalorder %s845_s5, %s1357_s1 }
  0x1d   : > { %p848_p11 = pnand %p847_p10, %p846_p5 }
  0x1f   : > { %p849_p1 = pneg %p848_p11 }
  0x21   : > { %p854_p12 = pnand %p852_p0, %p849_p1 }
  0x23   : > { %857 = shalt.err (!%p854_p12)
}
  0x24   : > { %s858_s16 = scalar_lea.vmem %s133_s25, 64  ;;  %p866_p7 = scmp.lt.s32.totalorder %s133_s25, %s133_s25 }
  0x25   : > { %p859_p9 = scmp.ne.s32.totalorder %s133_s25, %s858_s16  ;;  %p867_p13 = scmp.lt.s32.totalorder %s858_s16, %s858_s16 }
  0x27   : > { %p861_p8 = pnand %p859_p9, %p847_p10  ;;  %p868_p4 = por %p867_p13, %p866_p7 }
  0x29   : > { %p862_p3 = pneg %p861_p8 }
  0x2b   : > { %p869_p6 = pnand %p868_p4, %p862_p3 }
  0x2d   : > { %872 = shalt.err (!%p869_p6)
}
  0x2e   : > { %776 = dma.hbm_to_vmem [thread:$0]  (!%p1092_p2), %s1357_s1, 64, %s133_s25, [#allocation8]  }
  0x2f   : > { %p1374_p9 = scmp.ne.s32.totalorder %s1373_s29, 0  ;;  %s761_s3 = smul.u32 400, %s143_s30 }
  0x30   : > { %s752_s5 = sshll.u32 %s985_s13, 7  ;;  %s1137_s29 = scalar_lea.sflag [#allocation5], %s143_s30 }
  0x31   : > { %s1390_s28 = smov (%p1374_p9, %s31_s28), 0  ;;  %s1128_s7 = scalar_lea.hbm %s1356_s0, %s752_s5 }
  0x32   : > { %s36_s4 = ssub.s32 %s985_s13, %s1390_s28  ;;  %s147_s8 = scalar_lea.vmem [#allocation4], %s761_s3 }
  0x33   : > { %p38_p3 = scmp.eq.s32.totalorder %s36_s4, 0  ;;  %s156_s15 = sshll.u32 %s147_s8, 4  ;;  %s1135_s15 = int_to_ptr.vmem [resolvable:$true] %s156_s15 }
  0x34   : > { %s873_s16 = scalar_lea.hbm %s1128_s7, 6400  ;;  %p1375_p8 = scmp.ne.s32.totalorder %s1371_s26, 0 }
  0x35   : > { %s1133_s25 = scalar_select %p38_p3, %s977_s11, %s40_s17  }
  0x36   : > { %p874_p7 = scmp.ne.s32.totalorder %s1128_s7, %s873_s16  ;;  %p875_p12 = pneg %p1375_p8 }
  0x37   : > { %s878_s3 = scalar_lea.hbm %s1356_s0, 12800  ;;  %p879_p2 = scmp.lt.u32.totalorder %s1128_s7, %s1356_s0 }
  0x38   : > { %p876_p13 = pnand %p875_p12, %p874_p7  ;;  %p880_p6 = scmp.lt.u32.totalorder %s878_s3, %s873_s16 }
  0x39   : > { %p882_p10 = scmp.lt.u32.totalorder %s873_s16, %s1128_s7 }
  0x3a   : > { %p877_p4 = pneg %p876_p13  ;;  %p881_p5 = por %p880_p6, %p879_p2 }
  0x3c   : > { %p883_p11 = por %p882_p10, %p881_p5 }
  0x3e   : > { %p884_p1 = pnand %p883_p11, %p877_p4 }
  0x40   : > { %887 = shalt.err (!%p884_p1)
}
  0x41   : > { %s888_s17 = scalar_lea.vmem %s1135_s15, 6400  ;;  %s992_s30 = smov [#allocation4]  }
  0x42   : > { %p889_p0 = scmp.ne.s32.totalorder %s1135_s15, %s888_s17  ;;  %s893_s27 = sshll.u32 %s992_s30, 4  ;;  %s894_s27 = int_to_ptr.vmem [resolvable:$false] %s893_s27 }
  0x43   : > { %s895_s6 = scalar_lea.vmem %s894_s27, 12800  ;;  %p896_p7 = scmp.lt.s32.totalorder %s1135_s15, %s894_s27 }
  0x44   : > { %p891_p9 = pnand %p889_p0, %p875_p12  ;;  %p897_p13 = scmp.lt.s32.totalorder %s895_s6, %s888_s17 }
  0x46   : > { %p892_p3 = pneg %p891_p9  ;;  %p898_p2 = por %p897_p13, %p896_p7 }
  0x48   : > { %p899_p6 = pnand %p898_p2, %p892_p3 }
  0x4a   : > { %902 = shalt.err (!%p899_p6)
}
  0x4b   : > { %s993_s8 = smov 256   ;;  %s994_s16 = smov 128  }
  0x4c   : > { %s995_s19 = smov 8   ;;  %p1376_p12 = scmp.ne.s32.totalorder %s1370_s23, 0 }
  0x4d   : > { %780 = dma.hbm_to_vmem [thread:$0]  (!%p1375_p8), %s1128_s7, 6400, %s1135_s15, %s1137_s29, %s993_s8, %s994_s16, %s995_s19  }
  0x4e   : > { %168 = sbr.rel (%p1376_p12) target bundleno = 400 (0x190), region = 28  ;;  %s1168_s24 = sand.u32 (!%p1376_p12), 1, %s973_s10  }
  0x4f   : > { %s762_s3 = smul.u32 (!%p1376_p12), 400, %s1168_s24  ;;  %s171_s4 = scalar_lea.sflag (!%p1376_p12), [#allocation5], %s1168_s24 }
  0x50   : > { %p1377_p4 = scmp.ne.s32.totalorder (!%p1376_p12), %s1367_s20, 0 }
  0x51   : > { %s1172_s5 = scalar_lea.vmem (!%p1376_p12), [#allocation4], %s762_s3 }
  0x55   : > { %956 = dma.done.wait (%p1377_p4), %s171_s4, 6400  }
  0x56   : > { %958 = vsyncadd (%p1377_p4), %s171_s4, 4294960896  ;;  %p1378_p8 = scmp.ne.s32.totalorder %s1365_s18, 0 }
  0x58   : > { %960 = dma.done.wait (%p1378_p8), [#allocation8], 64  }
  0x59   : > { %962 = vsyncadd (%p1378_p8), [#allocation8], 4294967232  ;;  %v266_v0 = vlaneseq  ;;  %vm206_vm0 = vcmask 1041408   ;;  %v996_v1 = vmov 1983009808   ;;  %vm207_vm1 = vcmask 584706  }
  0x5a   : > { %v264_v2 = vunpack.c.l.s4 %v996_v1  ;;  %v997_v3 = vmov 0.0   ;;  %vm1183_vm2 = vmor %vm207_vm1, %vm206_vm0  ;;  %v260_v9 = vld [vmem:[#allocation7] sm:$0xf]  ;;  %vm624_vm3 = vcmask 582656   ;;  %v235_v40 = vld [vmem:[%s1172_s5 + $0xc8] sm:$0xff]  ;;  %vm597_vm4 = vcmask 1041409  }
  0x5b   : > { %205 = vst [vmem:[#allocation2] sm:$0x3] %v997_v3  ;;  %v267_v4 = vshrl.u32 %v266_v0, 7  ;;  %209 = vst.msk [vmem:[#allocation3] sm:$0xf] %vm1183_vm2, %v997_v3  ;;  %v236_v41 = vld [vmem:[%s1172_s5 + $0xd0] sm:$0xff] }
  0x5c   : > { %v265_v6 = vunpack.c.0.s8 %v264_v2  ;;  %v237_v48 = vld [vmem:[%s1172_s5 + $0xd8] sm:$0xff]  ;;  %v238_v55 = vld [vmem:[%s1172_s5 + $0xe0] sm:$0xff]  ;;  %v239_v62 = vld [vmem:[%s1172_s5 + $0xe8] sm:$0xff]  ;;  %s755_s20 = sshll.u32 %s1168_s24, 1  ;;  %s758_s23 = sshll.u32 %s981_s12, 5 }
  0x5d   : > { %v275_v8 = vsub.s32 0, %v267_v4  ;;  %v381_v11 = vsub.s32 1, %v267_v4  ;;  %v240_v3 = vld [vmem:[%s1172_s5 + $0xf0] sm:$0xff]  ;;  %s198_s26 = scalar_lea.vmem [#allocation9], %s755_s20  ;;  %s1307_s17 = scalar_lea.hbm %s1358_s2, %s758_s23 }
  0x5e   : > { %v268_v7 = vsub.s32 %v265_v6, %v267_v4  ;;  %s655_s7 = sshll.u32 %s198_s26, 4  ;;  %s642_s30 = scalar_lea.sflag [#allocation6], %s1168_s24  ;;  %s1309_s7 = int_to_ptr.vmem [resolvable:$true] %s655_s7 }
  0x5f   : > { %s903_s27 = scalar_lea.vmem %s1309_s7, 32  ;;  %p1381_p10 = scmp.ne.s32.totalorder %s1368_s21, 0 }
  0x60   : > { %v269_v10 = vrot.slane %v260_v9, %v268_v7  ;;  %v241_v7 = vld [vmem:[%s1172_s5 + $0xf8] sm:$0xff]  ;;  %p904_p5 = scmp.ne.s32.totalorder %s1309_s7, %s903_s27  ;;  %s998_s12 = smov [#allocation9]  }
  0x61   : > { %s907_s6 = sshll.u32 %s998_s12, 4  ;;  %s908_s6 = int_to_ptr.vmem [resolvable:$false] %s907_s6 }
  0x62   : > { %v276_v12 = vrot.slane %v269_v10, %v275_v8  ;;  %v602_v13 = vld [vmem:[#allocation3] sm:$0xf]  ;;  %v270_v14 = vcombine.high %v269_v10, %v269_v10  ;;  %v382_v16 = vrot.slane %v269_v10, %v381_v11  ;;  %p905_p11 = pnand %p904_p5, %p1381_p10  ;;  %s909_s8 = scalar_lea.vmem %s908_s6, 64 }
  0x63   : > { %v603_v15 = vadd.f32 %v602_v13, %v260_v9  ;;  %p910_p0 = scmp.lt.s32.totalorder %s1309_s7, %s908_s6  ;;  %p911_p9 = scmp.lt.s32.totalorder %s909_s8, %s903_s27 }
  0x64   : > { %282 = vbcast.lane.b32.xlu1 %v276_v12, 264  ;;  %278 = vbcast.lane.b32.xlu0 %v276_v12, 256  ;;  %v449_v17 = vrot.slane %v270_v14, %v381_v11  ;;  %v343_v18 = vrot.slane %v270_v14, %v275_v8  ;;  %p906_p1 = pneg %p905_p11 }
  0x65   : > { %607 = vst.msk [vmem:[#allocation3] sm:$0xf] %vm1183_vm2, %v603_v15  ;;  %p912_p3 = por %p911_p9, %p910_p0 }
  0x67   : > { %p913_p7 = pnand %p912_p3, %p906_p1 }
  0x68   : > { %384 = vbcast.lane.b32.xlu1 %v382_v16, 256 }
  0x6c   : > { %388 = vbcast.lane.b32.xlu1 %v382_v16, 264  ;;  %v756_v19 = vld.sshfl [vmem:[#allocation3] sm:$0x33 pattern:$0x76325410] }
  0x6d   : > { %v620_v20 = vcombine.high %v756_v19, %v756_v19  ;;  %v623_v21 = vsel %vm206_vm0, %v756_v19, 0.0 }
  0x6f   : > { %v625_v22 = vsel %vm624_vm3, %v620_v20, 0.0 }
  0x70   : > { %286 = vbcast.lane.b32.xlu1 %v276_v12, 272  ;;  %v626_v23 = vadd.f32 %v625_v22, %v623_v21  ;;  %v244_v21 = vld [vmem:[%s1172_s5 + $0x110] sm:$0xff] }
  0x74   : > { %392 = vbcast.lane.b32.xlu1 %v382_v16, 272 }
  0x78   : > { %290 = vbcast.lane.b32.xlu1 %v276_v12, 280 }
  0x7c   : > { %396 = vbcast.lane.b32.xlu1 %v382_v16, 280 }
  0x80   : > { %400 = vbcast.lane.b32.xlu1 %v382_v16, 288 }
  0x83   : > { %627 = vadd.xlane.f32.xlu0 %v626_v23 }
  0x84   : > { %404 = vbcast.lane.b32.xlu1 %v382_v16, 296 }
  0x88   : > { %408 = vbcast.lane.b32.xlu1 %v382_v16, 304 }
  0x8c   : > { %412 = vbcast.lane.b32.xlu1 %v382_v16, 312 }
  0x90   : > { %416 = vbcast.lane.b32.xlu1 %v382_v16, 320 }
  0x94   : > { %420 = vbcast.lane.b32.xlu1 %v382_v16, 328 }
  0x98   : > { %424 = vbcast.lane.b32.xlu1 %v382_v16, 336 }
  0x99   : > { %294 = vbcast.lane.b32.xlu0 %v276_v12, 288 }
  0x9c   : > { %428 = vbcast.lane.b32.xlu1 %v382_v16, 344 }
  0x9d   : > { %298 = vbcast.lane.b32.xlu0 %v276_v12, 296 }
  0xa0   : > { %432 = vbcast.lane.b32.xlu1 %v382_v16, 352 }
  0xa1   : > { %302 = vbcast.lane.b32.xlu0 %v276_v12, 304 }
  0xa4   : > { %436 = vbcast.lane.b32.xlu1 %v382_v16, 360 }
  0xa5   : > { %306 = vbcast.lane.b32.xlu0 %v276_v12, 312 }
  0xa8   : > { %440 = vbcast.lane.b32.xlu1 %v382_v16, 368 }
  0xa9   : > { %310 = vbcast.lane.b32.xlu0 %v276_v12, 320 }
  0xac   : > { %444 = vbcast.lane.b32.xlu1 %v382_v16, 376 }
  0xad   : > { %314 = vbcast.lane.b32.xlu0 %v276_v12, 328 }
  0xb0   : > { %451 = vbcast.lane.b32.xlu1 %v449_v17, 256 }
  0xb1   : > { %318 = vbcast.lane.b32.xlu0 %v276_v12, 336 }
  0xb4   : > { %455 = vbcast.lane.b32.xlu1 %v449_v17, 264 }
  0xb5   : > { %322 = vbcast.lane.b32.xlu0 %v276_v12, 344 }
  0xb8   : > { %459 = vbcast.lane.b32.xlu1 %v449_v17, 272 }
  0xb9   : > { %326 = vbcast.lane.b32.xlu0 %v276_v12, 352 }
  0xbc   : > { %463 = vbcast.lane.b32.xlu1 %v449_v17, 280 }
  0xbd   : > { %330 = vbcast.lane.b32.xlu0 %v276_v12, 360 }
  0xc0   : > { %467 = vbcast.lane.b32.xlu1 %v449_v17, 288 }
  0xc1   : > { %334 = vbcast.lane.b32.xlu0 %v276_v12, 368 }
  0xc4   : > { %471 = vbcast.lane.b32.xlu1 %v449_v17, 296 }
  0xc5   : > { %338 = vbcast.lane.b32.xlu0 %v276_v12, 376  ;;  %v242_v12 = vld [vmem:[%s1172_s5 + $0x100] sm:$0xff] }
  0xc8   : > { %475 = vbcast.lane.b32.xlu1 %v449_v17, 304 }
  0xc9   : > { %345 = vbcast.lane.b32.xlu0 %v343_v18, 256 }
  0xcc   : > { %479 = vbcast.lane.b32.xlu1 %v449_v17, 312 }
  0xcd   : > { %349 = vbcast.lane.b32.xlu0 %v343_v18, 264 }
  0xd0   : > { %483 = vbcast.lane.b32.xlu1 %v449_v17, 320  ;;  %v243_v17 = vld [vmem:[%s1172_s5 + $0x108] sm:$0xff] }
  0xd1   : > { %353 = vbcast.lane.b32.xlu0 %v343_v18, 272 }
  0xd5   : > { %357 = vbcast.lane.b32.xlu0 %v343_v18, 280 }
  0xd6   : > { %v1192_v24 = vpop.permute.xlu1 %282  ;;  %v279_v38 = vpop.permute.xlu0 %278 }
  0xd9   : > { %361 = vbcast.lane.b32.xlu0 %v343_v18, 288 }
  0xda   : > { %v385_v25 = vpop.permute.xlu1 %384 }
  0xdb   : > { %v510_v45 = vmul.f32 %v385_v25, %v235_v40  ;;  %v211_v25 = vld [vmem:[%s1172_s5 + $0x8] sm:$0xff] }
  0xdd   : > { %365 = vbcast.lane.b32.xlu0 %v343_v18, 296 }
  0xde   : > { %v389_v26 = vpop.permute.xlu1 %388 }
  0xdf   : > { %v511_v46 = vmul.f32 %v389_v26, %v236_v41  ;;  %v210_v26 = vld [vmem:[%s1172_s5] sm:$0xff] }
  0xe0   : > { %v485_v40 = vmul.f32 %v279_v38, %v210_v26  ;;  %v215_v38 = vld [vmem:[%s1172_s5 + $0x28] sm:$0xff]  ;;  %v252_v26 = vld [vmem:[%s1172_s5 + $0x150] sm:$0xff] }
  0xe1   : > { %369 = vbcast.lane.b32.xlu0 %v343_v18, 304  ;;  %v565_v52 = vadd.f32 %v511_v46, %v510_v45  ;;  %v246_v46 = vld [vmem:[%s1172_s5 + $0x120] sm:$0xff] }
  0xe2   : > { %v1194_v27 = vpop.permute.xlu1 %286 }
  0xe5   : > { %373 = vbcast.lane.b32.xlu0 %v343_v18, 312 }
  0xe6   : > { %v393_v28 = vpop.permute.xlu1 %392 }
  0xe7   : > { %v512_v53 = vmul.f32 %v393_v28, %v237_v48 }
  0xe9   : > { %377 = vbcast.lane.b32.xlu0 %v343_v18, 320  ;;  %v566_v59 = vadd.f32 %v565_v52, %v512_v53 }
  0xea   : > { %v1196_v29 = vpop.permute.xlu1 %290 }
  0xee   : > { %v397_v30 = vpop.permute.xlu1 %396 }
  0xef   : > { %v513_v60 = vmul.f32 %v397_v30, %v238_v55 }
  0xf1   : > { %v567_v1 = vadd.f32 %v566_v59, %v513_v60 }
  0xf2   : > { %v401_v31 = vpop.permute.xlu1 %400 }
  0xf3   : > { %v514_v2 = vmul.f32 %v401_v31, %v239_v62  ;;  %v212_v31 = vld [vmem:[%s1172_s5 + $0x10] sm:$0xff]  ;;  %v217_v62 = vld [vmem:[%s1172_s5 + $0x38] sm:$0xff] }
  0xf5   : > { %v568_v5 = vadd.f32 %v567_v1, %v514_v2 }
  0xf6   : > { %v405_v32 = vpop.permute.xlu1 %404 }
  0xf7   : > { %v515_v6 = vmul.f32 %v405_v32, %v240_v3  ;;  %v245_v32 = vld [vmem:[%s1172_s5 + $0x118] sm:$0xff] }
  0xf9   : > { %v569_v10 = vadd.f32 %v568_v5, %v515_v6  ;;  %v218_v5 = vld [vmem:[%s1172_s5 + $0x40] sm:$0xff] }
  0xfa   : > { %v409_v33 = vpop.permute.xlu1 %408 }
  0xfb   : > { %v516_v11 = vmul.f32 %v409_v33, %v241_v7 }
  0xfd   : > { %v570_v15 = vadd.f32 %v569_v10, %v516_v11  ;;  %v250_v11 = vld [vmem:[%s1172_s5 + $0x140] sm:$0xff] }
  0xfe   : > { %v413_v34 = vpop.permute.xlu1 %412 }
  0xff   : > { %v517_v16 = vmul.f32 %v413_v34, %v242_v12  ;;  %v486_v34 = vmul.f32 %v1192_v24, %v211_v25 }
 0x101   : > { %v571_v19 = vadd.f32 %v570_v15, %v517_v16  ;;  %v535_v48 = vadd.f32 %v486_v34, %v485_v40  ;;  %v222_v34 = vld [vmem:[%s1172_s5 + $0x60] sm:$0xff] }
 0x102   : > { %v417_v35 = vpop.permute.xlu1 %416 }
 0x103   : > { %v518_v20 = vmul.f32 %v417_v35, %v243_v17  ;;  %v213_v35 = vld [vmem:[%s1172_s5 + $0x18] sm:$0xff]  ;;  %v251_v17 = vld [vmem:[%s1172_s5 + $0x148] sm:$0xff] }
 0x104   : > { %v488_v24 = vmul.f32 %v1196_v29, %v213_v35 }
 0x105   : > { %v572_v28 = vadd.f32 %v571_v19, %v518_v20  ;;  %v220_v19 = vld [vmem:[%s1172_s5 + $0x50] sm:$0xff] }
 0x106   : > { %v421_v36 = vpop.permute.xlu1 %420 }
 0x107   : > { %v519_v30 = vmul.f32 %v421_v36, %v244_v21  ;;  %v214_v36 = vld [vmem:[%s1172_s5 + $0x20] sm:$0xff] }
 0x10a   : > { %v1198_v37 = vpop.permute.xlu1 %424 }
 0x10b   : > { %v520_v45 = vmul.f32 %v1198_v37, %v245_v32  ;;  %v216_v37 = vld [vmem:[%s1172_s5 + $0x30] sm:$0xff]  ;;  %v253_v32 = vld [vmem:[%s1172_s5 + $0x158] sm:$0xff] }
 0x10e   : > { %v1200_v39 = vpop.permute.xlu1 %428 }
 0x10f   : > { %v521_v53 = vmul.f32 %v1200_v39, %v246_v46  ;;  %v249_v39 = vld [vmem:[%s1172_s5 + $0x138] sm:$0xff]  ;;  %v223_v46 = vld [vmem:[%s1172_s5 + $0x68] sm:$0xff] }
 0x110   : > { %v628_v42 = vpop.xlane.xlu0 %627 }
 0x111   : > { %v629_v43 = vrot.slane %v628_v42, 4 }
 0x112   : > { %v1204_v44 = vpop.permute.xlu1 %432 }
 0x113   : > { %v630_v47 = vadd.f32 %v629_v43, %v628_v42  ;;  %v487_v42 = vmul.f32 %v1194_v27, %v212_v31  ;;  %v573_v43 = vadd.f32 %v572_v28, %v519_v30  ;;  %v221_v28 = vld [vmem:[%s1172_s5 + $0x58] sm:$0xff] }
 0x114   : > { %v1207_v49 = vpop.permute.xlu0 %294 }
 0x115   : > { %v631_v50 = vrot.slane %v630_v47, 2  ;;  %v574_v52 = vadd.f32 %v573_v43, %v520_v45  ;;  %v489_v27 = vmul.f32 %v1207_v49, %v214_v36  ;;  %v254_v45 = vld [vmem:[%s1172_s5 + $0x160] sm:$0xff] }
 0x116   : > { %v1209_v51 = vpop.permute.xlu1 %436 }
 0x117   : > { %v632_v54 = vadd.f32 %v631_v50, %v630_v47  ;;  %v536_v50 = vadd.f32 %v535_v48, %v487_v42  ;;  %v575_v29 = vadd.f32 %v574_v52, %v521_v53 }
 0x118   : > { %v299_v56 = vpop.permute.xlu0 %298 }
 0x119   : > { %v633_v57 = vrot.slane %v632_v54, 1  ;;  %v537_v59 = vadd.f32 %v536_v50, %v488_v24  ;;  %v490_v60 = vmul.f32 %v299_v56, %v215_v38  ;;  %v219_v56 = vld [vmem:[%s1172_s5 + $0x48] sm:$0xff]  ;;  %v224_v38 = vld [vmem:[%s1172_s5 + $0x70] sm:$0xff] }
 0x11a   : > { %v1212_v58 = vpop.permute.xlu1 %440  ;;  %v255_v24 = vld [vmem:[%s1172_s5 + $0x168] sm:$0xff] }
 0x11b   : > { %v634_v61 = vadd.f32 %v633_v57, %v632_v54  ;;  %v247_v54 = vld [vmem:[%s1172_s5 + $0x128] sm:$0xff]  ;;  %v538_v2 = vadd.f32 %v537_v59, %v489_v27  ;;  %v524_v16 = vmul.f32 %v1212_v58, %v249_v39  ;;  %v256_v27 = vld [vmem:[%s1172_s5 + $0x170] sm:$0xff]  ;;  %v258_v39 = vld [vmem:[%s1172_s5 + $0x180] sm:$0xff] }
 0x11c   : > { %v303_v63 = vpop.permute.xlu0 %302  ;;  %v522_v1 = vmul.f32 %v1204_v44, %v247_v54 }
 0x11d   : > { %763 = vpush %v634_v61  ;;  %v248_v61 = vld [vmem:[%s1172_s5 + $0x130] sm:$0xff]  ;;  %v491_v3 = vmul.f32 %v303_v63, %v216_v37  ;;  %v539_v7 = vadd.f32 %v538_v2, %v490_v60  ;;  %v225_v37 = vld [vmem:[%s1172_s5 + $0x78] sm:$0xff] }
 0x11e   : > { %v1215_v0 = vpop.permute.xlu1 %444  ;;  %v523_v6 = vmul.f32 %v1209_v51, %v248_v61  ;;  %v576_v15 = vadd.f32 %v575_v29, %v522_v1  ;;  %v257_v61 = vld [vmem:[%s1172_s5 + $0x178] sm:$0xff] }
 0x11f   : > { %v540_v44 = vadd.f32 %v539_v7, %v491_v3  ;;  %v525_v51 = vmul.f32 %v1215_v0, %v250_v11  ;;  %v259_v11 = vld [vmem:[%s1172_s5 + $0x188] sm:$0xff] }
 0x120   : > { %v307_v4 = vpop.permute.xlu0 %306  ;;  %v577_v21 = vadd.f32 %v576_v15, %v523_v6 }
 0x121   : > { %v492_v10 = vmul.f32 %v307_v4, %v217_v62  ;;  %v226_v62 = vld [vmem:[%s1172_s5 + $0x80] sm:$0xff] }
 0x122   : > { %v1219_v8 = vpop.permute.xlu1 %451  ;;  %v578_v30 = vadd.f32 %v577_v21, %v524_v16 }
 0x123   : > { %v541_v25 = vadd.f32 %v540_v44, %v492_v10  ;;  %v526_v58 = vmul.f32 %v1219_v8, %v251_v17 }
 0x124   : > { %v1221_v9 = vpop.permute.xlu0 %310  ;;  %v579_v0 = vadd.f32 %v578_v30, %v525_v51  ;;  %v230_v51 = vld [vmem:[%s1172_s5 + $0xa0] sm:$0xff] }
 0x125   : > { %v493_v63 = vmul.f32 %v1221_v9, %v218_v5 }
 0x126   : > { %v1226_v14 = vpop.permute.xlu1 %455  ;;  %v580_v8 = vadd.f32 %v579_v0, %v526_v58 }
 0x127   : > { %v542_v31 = vadd.f32 %v541_v25, %v493_v63  ;;  %v527_v42 = vmul.f32 %v1226_v14, %v252_v26  ;;  %v229_v63 = vld [vmem:[%s1172_s5 + $0x98] sm:$0xff] }
 0x128   : > { %v1224_v13 = vpop.permute.xlu0 %314 }
 0x129   : > { %v494_v4 = vmul.f32 %v1224_v13, %v219_v56  ;;  %v581_v52 = vadd.f32 %v580_v8, %v527_v42  ;;  %v228_v56 = vld [vmem:[%s1172_s5 + $0x90] sm:$0xff]  ;;  %v234_v8 = vld [vmem:[%s1172_s5 + $0xc0] sm:$0xff] }
 0x12a   : > { %v1232_v22 = vpop.permute.xlu1 %459 }
 0x12b   : > { %v543_v13 = vadd.f32 %v542_v31, %v494_v4  ;;  %v528_v36 = vmul.f32 %v1232_v22, %v253_v32 }
 0x12c   : > { %v1229_v18 = vpop.permute.xlu0 %318 }
 0x12d   : > { %v495_v9 = vmul.f32 %v1229_v18, %v220_v19  ;;  %v582_v22 = vadd.f32 %v581_v52, %v528_v36 }
 0x12e   : > { %v1244_v41 = vpop.permute.xlu1 %463 }
 0x12f   : > { %v544_v48 = vadd.f32 %v543_v13, %v495_v9  ;;  %v529_v14 = vmul.f32 %v1244_v41, %v254_v45  ;;  %v232_v9 = vld [vmem:[%s1172_s5 + $0xb0] sm:$0xff] }
 0x130   : > { %v1234_v23 = vpop.permute.xlu0 %322 }
 0x131   : > { %v496_v43 = vmul.f32 %v1234_v23, %v221_v28  ;;  %v583_v1 = vadd.f32 %v582_v22, %v529_v14  ;;  %v231_v28 = vld [vmem:[%s1172_s5 + $0xa8] sm:$0xff] }
 0x132   : > { %v468_v55 = vpop.permute.xlu1 %467 }
 0x133   : > { %v545_v53 = vadd.f32 %v544_v48, %v496_v43  ;;  %v530_v59 = vmul.f32 %v468_v55, %v255_v24 }
 0x134   : > { %v1240_v33 = vpop.permute.xlu0 %326 }
 0x135   : > { %v497_v18 = vmul.f32 %v1240_v33, %v222_v34  ;;  %v584_v5 = vadd.f32 %v583_v1, %v530_v59 }
 0x136   : > { %v472_v12 = vpop.permute.xlu1 %471 }
 0x137   : > { %v546_v60 = vadd.f32 %v545_v53, %v497_v18  ;;  %v531_v2 = vmul.f32 %v472_v12, %v256_v27 }
 0x138   : > { %v1250_v47 = vpop.permute.xlu0 %330 }
 0x139   : > { %v498_v23 = vmul.f32 %v1250_v47, %v223_v46  ;;  %v227_v47 = vld [vmem:[%s1172_s5 + $0x88] sm:$0xff]  ;;  %v585_v15 = vadd.f32 %v584_v5, %v531_v2 }
 0x13a   : > { %v476_v40 = vpop.permute.xlu1 %475 }
 0x13b   : > { %v547_v41 = vadd.f32 %v546_v60, %v498_v23  ;;  %v532_v6 = vmul.f32 %v476_v40, %v257_v61 }
 0x13c   : > { %v335_v57 = vpop.permute.xlu0 %334 }
 0x13d   : > { %v499_v33 = vmul.f32 %v335_v57, %v224_v38  ;;  %v586_v17 = vadd.f32 %v585_v15, %v532_v6 }
 0x13e   : > { %v480_v54 = vpop.permute.xlu1 %479 }
 0x13f   : > { %v548_v7 = vadd.f32 %v547_v41, %v499_v33  ;;  %v533_v16 = vmul.f32 %v480_v54, %v258_v39  ;;  %v261_v33 = vld [vmem:[#allocation2] sm:$0x3] }
 0x140   : > { %v339_v49 = vpop.permute.xlu0 %338 }
 0x141   : > { %v500_v3 = vmul.f32 %v339_v49, %v225_v37  ;;  %v587_v4 = vadd.f32 %v586_v17, %v533_v16 }
 0x142   : > { %v484_v55 = vpop.permute.xlu1 %483 }
 0x143   : > { %v549_v44 = vadd.f32 %v548_v7, %v500_v3  ;;  %v534_v49 = vmul.f32 %v484_v55, %v259_v11 }
 0x144   : > { %v346_v20 = vpop.permute.xlu0 %345 }
 0x145   : > { %v501_v10 = vmul.f32 %v346_v20, %v226_v62  ;;  %v588_v30 = vadd.f32 %v587_v4, %v534_v49 }
 0x147   : > { %v550_v19 = vadd.f32 %v549_v44, %v501_v10  ;;  %v589_v0 = vrot.slane %v588_v30, 4 }
 0x148   : > { %v350_v35 = vpop.permute.xlu0 %349 }
 0x149   : > { %v502_v12 = vmul.f32 %v350_v35, %v227_v47  ;;  %v233_v35 = vld [vmem:[%s1172_s5 + $0xb8] sm:$0xff]  ;;  %v590_v36 = vadd.f32 %v589_v0, %v588_v30 }
 0x14b   : > { %v551_v20 = vadd.f32 %v550_v19, %v502_v12 }
 0x14c   : > { %v354_v50 = vpop.permute.xlu0 %353 }
 0x14d   : > { %v503_v21 = vmul.f32 %v354_v50, %v228_v56  ;;  %v591_v50 = vrot.slane %v590_v36, 2 }
 0x14e   : > { %s764_s18 = spop %763 }
 0x14f   : > { %v552_v58 = vadd.f32 %v551_v20, %v503_v21  ;;  %v592_v53 = vadd.f32 %v591_v50, %v590_v36  ;;  %v637_v59 = vstv %s764_s18 }
 0x150   : > { %v358_v29 = vpop.permute.xlu0 %357  ;;  %843 = vrcp.f32 %v637_v59 }
 0x151   : > { %v504_v26 = vmul.f32 %v358_v29, %v229_v63  ;;  %v593_v54 = vrot.slane %v592_v53, 1 }
 0x153   : > { %v553_v34 = vadd.f32 %v552_v58, %v504_v26  ;;  %v594_v60 = vadd.f32 %v593_v54, %v592_v53 }
 0x154   : > { %v362_v57 = vpop.permute.xlu0 %361 }
 0x155   : > { %v505_v31 = vmul.f32 %v362_v57, %v230_v51 }
 0x157   : > { %v554_v42 = vadd.f32 %v553_v34, %v505_v31 }
 0x158   : > { %v366_v25 = vpop.permute.xlu0 %365 }
 0x159   : > { %v506_v40 = vmul.f32 %v366_v25, %v231_v28 }
 0x15a   : > { %v844_v1 = vpop.eup %843 }
 0x15b   : > { %v555_v45 = vadd.f32 %v554_v42, %v506_v40 }
 0x15c   : > { %v370_v32 = vpop.permute.xlu0 %369 }
 0x15d   : > { %v507_v13 = vmul.f32 %v370_v32, %v232_v9 }
 0x15f   : > { %v556_v48 = vadd.f32 %v555_v45, %v507_v13 }
 0x160   : > { %v374_v43 = vpop.permute.xlu0 %373 }
 0x161   : > { %v508_v46 = vmul.f32 %v374_v43, %v233_v35 }
 0x163   : > { %v557_v24 = vadd.f32 %v556_v48, %v508_v46 }
 0x164   : > { %v378_v18 = vpop.permute.xlu0 %377 }
 0x165   : > { %v509_v38 = vmul.f32 %v378_v18, %v234_v8 }
 0x167   : > { %v558_v52 = vadd.f32 %v557_v24, %v509_v38 }
 0x169   : > { %v559_v14 = vrot.slane %v558_v52, 4 }
 0x16b   : > { %v560_v23 = vadd.f32 %v559_v14, %v558_v52 }
 0x16d   : > { %v561_v27 = vrot.slane %v560_v23, 2 }
 0x16f   : > { %v562_v37 = vadd.f32 %v561_v27, %v560_v23 }
 0x171   : > { %v563_v22 = vrot.slane %v562_v37, 1 }
 0x173   : > { %v564_v61 = vadd.f32 %v563_v22, %v562_v37 }
 0x175   : > { %v598_v62 = vsel %vm597_vm4, %v594_v60, %v564_v61 }
 0x176   : > { %v600_v29 = vadd.f32 %v598_v62, %v261_v33 }
 0x178   : > { %601 = vst [vmem:[#allocation2] sm:$0x3] %v600_v29 }
 0x17f   : > { %v636_v2 = vld [vmem:[#allocation2] sm:$0x3] }
 0x180   : > { %v639_v41 = vmul.f32 %v844_v1, %v636_v2 }
 0x182   : > { %640 = vst [vmem:[%s198_s26] sm:$0x3] %v639_v41 }
 0x183   : > { %916 = shalt.err (!%p913_p7)
}
 0x184   : > { %s917_s16 = scalar_lea.hbm %s1307_s17, 32  ;;  %s921_s3 = scalar_lea.hbm %s1358_s2, 64 }
 0x185   : > { %p918_p13 = scmp.ne.s32.totalorder %s1307_s17, %s917_s16  ;;  %p922_p12 = scmp.lt.u32.totalorder %s1307_s17, %s1358_s2 }
 0x186   : > { %p923_p4 = scmp.lt.u32.totalorder %s921_s3, %s917_s16  ;;  %p925_p5 = scmp.lt.u32.totalorder %s917_s16, %s1307_s17 }
 0x187   : > { %p919_p2 = pnand %p918_p13, %p1381_p10 }
 0x188   : > { %p924_p8 = por %p923_p4, %p922_p12 }
 0x189   : > { %p920_p6 = pneg %p919_p2 }
 0x18a   : > { %p926_p11 = por %p925_p5, %p924_p8 }
 0x18c   : > { %p927_p1 = pnand %p926_p11, %p920_p6 }
 0x18e   : > { %930 = shalt.err (!%p927_p1)
}
 0x18f   : > { %771 = dma.vmem_to_hbm [thread:$0]  (%p1381_p10), %s1309_s7, 32, %s1307_s17, %s642_s30  }
 0x190 PF: > { %s667_s18 = sand.u32 1, %s969_s9   ;;  %p1382_p0 = scmp.ne.s32.totalorder %s1369_s22, 0 }
 0x191   : > { %p1383_p9 = scmp.ge.s32.totalorder %s989_s14, 2  ;;  %s668_s20 = scalar_lea.sflag [#allocation6], %s667_s18 }
 0x193   : > { %p782_p3 = pnand %p1383_p9, %p1382_p0 }
 0x195   : > { %964 = dma.done.wait (!%p782_p3), %s668_s20, 32  }
 0x196   : > { %966 = vsyncadd (!%p782_p3), %s668_s20, 4294967264  ;;  %s19_s14 = sadd.s32 1, %s989_s14   ;;  %s1384_s9 = smov %s973_s10 }
 0x197   : > { %p16_p7 = scmp.ge.s32.totalorder %s19_s14, 4   ;;  %s1385_s10 = smov %s977_s11 }
 0x198   : > { %s1386_s11 = smov %s1133_s25  ;;  %s1387_s12 = smov %s985_s13 }
 0x199   : > { %s1388_s13 = smov %s1390_s28  ;;  %18 = sbr.rel (!%p16_p7) target bundleno = 7 (0x7), region = 86 }
 0x1a0   :  { %673 = vsyncpa [#allocation5], 1 }
 0x1a1   :  { %675 = vsyncpa [#allocation5 + $0x1], 1 }
 0x1a2   :  { %676 = vsyncpa [#allocation8], 1 }
 0x1a3   :  { %677 = vsyncpa [#allocation6], 1 }
 0x1a4   :  { %679 = vsyncpa [#allocation6 + $0x1], 1 }

</bundles_post_ra>
